<compile_context>
chip_gen: v6e
topology: v6e:2x2x1
jax: 0.10.0
libtpu: 0.0.40
codegen_flags: <defaults>
</compile_context>

<pallas_src>
import functools

import jax
import jax.numpy as jnp
from jax.experimental import pallas as pl
from jax.experimental.pallas import tpu as pltpu


def _round_up(x, m):
    return ((x + m - 1) // m) * m


def _mc_loss_kernel(score_ref, target_ref, out_ref, *, rem):
    """One batch tile -> one per-tile partial hinge sum.

    score_ref:  (C, TB) VMEM tile, caller dtype (single upcast to f32 here)
    target_ref: (1, TB) int8 VMEM tile
    out_ref:    (1, 8, 128) f32 block owned by this grid step (partial sum,
                broadcast into the whole block; wrapper reads [.., 0, 0])
    rem:        N % TB (Python int). 0 -> no ragged tile exists; otherwise only
                the last grid step masks lanes >= rem.
    """
    score = score_ref[...].astype(jnp.float32)                  # (C, TB)
    tgt = target_ref[...].astype(jnp.int32)                     # (1, TB)

    # One-hot mask of the correct option (option index = sublane).
    opt = jax.lax.broadcasted_iota(jnp.int32, score.shape, 0)   # (C, TB)
    is_correct = opt == tgt                                     # (C, TB)

    # score[b, target[b]] via masked sublane sum (exactly one hit per column
    # for in-range targets).
    correct = jnp.sum(jnp.where(is_correct, score, 0.0),
                      axis=0, keepdims=True)                    # (1, TB)

    # Hinge for every option.  With the reference's hard-coded margin of 1.0 the
    # correct column contributes exactly max(0, 1 + s_t - s_t) = 1.0, which is
    # subtracted per row instead of a second select.  Folding the +1.0 into the
    # small (1, TB) row keeps the big (C, TB) chain at 2 VALU ops per element.
    c1 = correct - 1.0                                          # (1, TB)
    hinge = jnp.maximum(score - c1, 0.0)                        # (C, TB)
    per_row = jnp.sum(hinge, axis=0, keepdims=True) - 1.0       # (1, TB)

    def _emit(rows):
        part = jnp.sum(rows, axis=1, keepdims=True)             # (1, 1)
        out_ref[...] = jnp.broadcast_to(part.reshape(1, 1, 1), out_ref.shape)

    if rem == 0:
        # Statically known: no tile is ragged anywhere -> no mask work at all.
        _emit(per_row)
    else:
        last = pl.num_programs(0) - 1

        @pl.when(pl.program_id(0) != last)      # interior tiles: unmasked
        def _():
            _emit(per_row)

        @pl.when(pl.program_id(0) == last)      # ragged tile: select-mask padding
        def _():
            lane = jax.lax.broadcasted_iota(jnp.int32, per_row.shape, 1)
            _emit(jnp.where(lane < rem, per_row, 0.0))


def multiple_choice_loss(score, target, *, num_option=5, margin=1,
                         size_average=True, tile_b=65536,
                         transposed_scores=False):
    """Pallas implementation of MultipleChoiceLoss.forward.

    score:  (N, C) float array (f32 or bf16), C == num_option.  Producers that can
            emit the scores option-major may pass (C, N) with
            transposed_scores=True to skip the wrapper-side relayout.
    target: (N,) int array of correct option indices in [0, C).
    returns scalar float32 loss
    """
    del margin  # the reference forward hard-codes margin = 1.0
    score = jnp.asarray(score)
    if transposed_scores:
        C, N = score.shape
        score_t = score
    else:
        N, C = score.shape
        score_t = jnp.transpose(score)          # lane-dense (C, N) presentation
    assert C == num_option, "num_option must match the option dimension of score"

    cnt = N * (C - 1)
    if cnt == 0:
        return jnp.float32(0.0)

    # Target stream as int8: pure streamed HBM bytes, 4x fewer than int32.
    target_row = jnp.asarray(target).astype(jnp.int8).reshape(1, N)

    # Batch tile along the lane axis.  Large tiles amortize per-step overhead;
    # the cap keeps the double-buffered footprint well inside scoped VMEM.
    tb_cap = max(128, min(_round_up(int(tile_b), 128), 131072))
    tb = N if N <= tb_cap else tb_cap            # block == full array for small N
    grid = (pl.cdiv(N, tb),)
    rem = N % tb

    # Double-buffered footprint: score pads to 8 sublanes of f32, int8 target pads
    # to (at most) 32 sublanes -> ~128 * tb bytes total; add headroom.
    vmem_need = 2 * (8 * tb * 4 + 32 * tb) + (1 << 20)
    vmem_limit = int(min(64 * 1024 * 1024, max(32 * 1024 * 1024, vmem_need)))

    kernel = functools.partial(_mc_loss_kernel, rem=rem)

    partials = pl.pallas_call(
        kernel,
        out_shape=jax.ShapeDtypeStruct((grid[0], 8, 128), jnp.float32),
        grid=grid,
        in_specs=[
            # (C, tb): sublanes = full option dim, lanes = 128-multiple batch tile
            # (or the full array for small N).
            pl.BlockSpec((C, tb), lambda i: (0, i)),
            pl.BlockSpec((1, tb), lambda i: (0, i)),
        ],
        # One distinct, fully (8,128)-tiled output block per grid step: no resident
        # accumulator, so the axis is truly parallel (megacore on v7x) and the
        # final reduction is a tiny tree-sum in the wrapper.
        out_specs=pl.BlockSpec((1, 8, 128), lambda i: (i, 0, 0)),
        compiler_params=pltpu.CompilerParams(
            dimension_semantics=("parallel",),
            vmem_limit_bytes=vmem_limit),
    )(score_t, target_row)

    total = jnp.sum(partials[:, 0, 0])
    if size_average:
        total = total / cnt
    return total


def _reference_loss(score, target, *, size_average=True):
    # Vectorized pure-JAX reference mirroring the PyTorch double loop.
    score = jnp.asarray(score, jnp.float32)
    target = jnp.asarray(target, jnp.int32)
    N, C = score.shape
    correct = jnp.take_along_axis(score, target.reshape(N, 1), axis=1)  # (N, 1)
    hinge = jnp.maximum(0.0, 1.0 + score - correct)
    not_correct = (jax.lax.broadcasted_iota(jnp.int32, (N, C), 1)
                   != target.reshape(N, 1))
    loss = jnp.sum(jnp.where(not_correct, hinge, 0.0))
    cnt = N * (C - 1)
    if cnt == 0:
        return jnp.float32(0.0)
    return loss / cnt if size_average else loss


if __name__ == "__main__":
    key = jax.random.PRNGKey(0)
    k1, k2, k3, k4, k5, k6 = jax.random.split(key, 6)

    C = 5

    # 1) Small single-block case (block == full array): batch=4, num_option=5.
    N = 4
    score = jax.random.normal(k1, (N, C), dtype=jnp.float32)
    target = jax.random.randint(k2, (N,), 0, C, dtype=jnp.int32)

    loss = jax.block_until_ready(
        multiple_choice_loss(score, target, num_option=C, size_average=True))
    ref = _reference_loss(score, target, size_average=True)
    assert abs(float(loss) - float(ref)) < 1e-5, (float(loss), float(ref))

    loss_sum = jax.block_until_ready(
        multiple_choice_loss(score, target, num_option=C, size_average=False))
    ref_sum = _reference_loss(score, target, size_average=False)
    assert abs(float(loss_sum) - float(ref_sum)) < 1e-4, (float(loss_sum), float(ref_sum))

    # 2) Multi-tile with a ragged last tile (per-tile partials + edge-only lane
    #    masking): batch=300, tile_b=128 -> grid=3, rem=44.
    N2 = 300
    score2 = jax.random.normal(k3, (N2, C), dtype=jnp.float32)
    target2 = jax.random.randint(k4, (N2,), 0, C, dtype=jnp.int32)
    loss2 = jax.block_until_ready(
        multiple_choice_loss(score2, target2, num_option=C, tile_b=128))
    ref2 = _reference_loss(score2, target2, size_average=True)
    assert abs(float(loss2) - float(ref2)) < 1e-5, (float(loss2), float(ref2))

    # 3) bf16 scores, multi-tile, exact tile multiple (rem == 0 path): batch=256.
    N3 = 256
    score3 = jax.random.normal(k5, (N3, C), dtype=jnp.float32).astype(jnp.bfloat16)
    target3 = jax.random.randint(k6, (N3,), 0, C, dtype=jnp.int32)
    loss3 = jax.block_until_ready(
        multiple_choice_loss(score3, target3, num_option=C, tile_b=128))
    ref3 = _reference_loss(score3.astype(jnp.float32), target3, size_average=True)
    assert abs(float(loss3) - float(ref3)) < 1e-4, (float(loss3), float(ref3))

    print("KERNEL_OK")
</pallas_src>

<mosaic_0001>
module attributes {stable_mosaic.version = 11 : i64} {
  func.func @_mc_loss_kernel(%arg0: i32, %arg1: memref<5x4xf32, #tpu.memory_space<vmem>>, %arg2: memref<1x4xi8, #tpu.memory_space<vmem>>, %arg3: memref<1x8x128xf32, #tpu.memory_space<vmem>>) attributes {dimension_semantics = [#tpu.dimension_semantics<parallel>], iteration_bounds = array<i64: 1>, scalar_prefetch = 0 : i64, scratch_operands = 0 : i64, tpu.core_type = #tpu.core_type<tc>, window_params = [{transform_indices = @transform_0, window_bounds = array<i64: 5, 4>}, {transform_indices = @transform_1, window_bounds = array<i64: 1, 4>}, {transform_indices = @transform_2, window_bounds = array<i64: 1, 8, 128>}]} {
    %c0 = arith.constant 0 : index
    %c0_0 = arith.constant 0 : index
    %0 = vector.load %arg1[%c0, %c0_0] : memref<5x4xf32, #tpu.memory_space<vmem>>, vector<5x4xf32>
    %c0_1 = arith.constant 0 : index
    %c0_2 = arith.constant 0 : index
    %1 = vector.load %arg2[%c0_1, %c0_2] : memref<1x4xi8, #tpu.memory_space<vmem>>, vector<1x4xi8>
    %2 = arith.extsi %1 : vector<1x4xi8> to vector<1x4xi32>
    %3 = tpu.iota {dimensions = array<i32: 0>} : vector<5x4xi32>
    %4 = vector.broadcast %2 : vector<1x4xi32> to vector<5x4xi32>
    %5 = arith.cmpi eq, %3, %4 : vector<5x4xi32>
    %cst = arith.constant 0.000000e+00 : f32
    %6 = vector.broadcast %cst : f32 to vector<5x4xf32>
    %7 = arith.select %5, %0, %6 : vector<5x4xi1>, vector<5x4xf32>
    %cst_3 = arith.constant dense<0.000000e+00> : vector<4xf32>
    %8 = vector.multi_reduction <add>, %7, %cst_3 [0] : vector<5x4xf32> to vector<4xf32>
    %9 = vector.shape_cast %8 : vector<4xf32> to vector<1x4xf32>
    %cst_4 = arith.constant 1.000000e+00 : f32
    %10 = vector.broadcast %cst_4 : f32 to vector<1x4xf32>
    %11 = arith.subf %9, %10 : vector<1x4xf32>
    %12 = vector.broadcast %11 : vector<1x4xf32> to vector<5x4xf32>
    %13 = arith.subf %0, %12 : vector<5x4xf32>
    %cst_5 = arith.constant 0.000000e+00 : f32
    %14 = vector.broadcast %cst_5 : f32 to vector<5x4xf32>
    %15 = arith.maximumf %13, %14 : vector<5x4xf32>
    %cst_6 = arith.constant dense<0.000000e+00> : vector<4xf32>
    %16 = vector.multi_reduction <add>, %15, %cst_6 [0] : vector<5x4xf32> to vector<4xf32>
    %17 = vector.shape_cast %16 : vector<4xf32> to vector<1x4xf32>
    %cst_7 = arith.constant 1.000000e+00 : f32
    %18 = vector.broadcast %cst_7 : f32 to vector<1x4xf32>
    %19 = arith.subf %17, %18 : vector<1x4xf32>
    %cst_8 = arith.constant dense<0.000000e+00> : vector<1xf32>
    %20 = vector.multi_reduction <add>, %19, %cst_8 [1] : vector<1x4xf32> to vector<1xf32>
    %21 = vector.shape_cast %20 : vector<1xf32> to vector<1x1xf32>
    %22 = vector.shape_cast %21 : vector<1x1xf32> to vector<1x1x1xf32>
    %23 = vector.shape_cast %22 : vector<1x1x1xf32> to vector<1x1x1xf32>
    %24 = vector.broadcast %23 : vector<1x1x1xf32> to vector<1x8x128xf32>
    %c0_9 = arith.constant 0 : index
    %c0_10 = arith.constant 0 : index
    %c0_11 = arith.constant 0 : index
    %25 = vector.load %arg3[%c0_9, %c0_10, %c0_11] : memref<1x8x128xf32, #tpu.memory_space<vmem>>, vector<1x8x128xf32>
    tpu.vector_store %arg3[%c0_9, %c0_10, %c0_11], %24 {strides = array<i32>} : memref<1x8x128xf32, #tpu.memory_space<vmem>>, vector<1x8x128xf32>,
    return
  }
  func.func @transform_0(%arg0: i32) -> (i32, i32) {
    %c0_i32 = arith.constant 0 : i32
    %c0_i32_0 = arith.constant 0 : i32
    return %c0_i32, %arg0 : i32, i32
  }
  func.func @transform_1(%arg0: i32) -> (i32, i32) {
    %c0_i32 = arith.constant 0 : i32
    %c0_i32_0 = arith.constant 0 : i32
    return %c0_i32, %arg0 : i32, i32
  }
  func.func @transform_2(%arg0: i32) -> (i32, i32, i32) {
    %c0_i32 = arith.constant 0 : i32
    %c0_i32_0 = arith.constant 0 : i32
    %c0_i32_1 = arith.constant 0 : i32
    return %arg0, %c0_i32, %c0_i32_0 : i32, i32, i32
  }
}

</mosaic_0001>

<bundles_post_ra>
// kernel: tpu_custom_call.1
= control target key start
LH: loop header
LB: loop body
LE: loop exit
PB: predicated region body
PF: predicated region fallthrough
CT: control target
= control target key end

     0   :  { %v15_v1 = vlaneseq  ;;  %s111_s0 = inlined_call_operand.vmem [shape: f32[5,4], index: 0, kind: input, shape index: {}]   ;;  %s112_s1 = inlined_call_operand.vmem [shape: s8[1,4], index: 1, kind: input, shape index: {}]   ;;  %s113_s2 = inlined_call_operand.hbm [shape: f32[1,8,128], index: 2, kind: output, shape index: {}]  }
   0x1   :  { %v13_v0 = vld [vmem:[%s112_s1] sm:$0x1] }
   0x2   :  { %7 = vsyncpa [#allocation3], 0  ;;  %v14_v2 = vunpack.c.0.s8 %v13_v0  ;;  %v16_v3 = vshrl.u32 %v15_v1, 7  ;;  %v12_v5 = vld [vmem:[%s111_s0] sm:$0x1f]  ;;  %vm23_vm0 = vcmask 28672  }
   0x3   :  { %vm42_vm2 = vcmask 31744   ;;  %s86_s0 = smov [#allocation2]  }
   0x4   :  { %v19_v4 = vsub.s32 0, %v16_v3  ;;  %s53_s1 = sshll.u32 %s86_s0, 4  ;;  %s54_s1 = int_to_ptr.vmem [resolvable:$true] %s53_s1 }
   0x5   :  { %s64_s13 = scalar_lea.vmem %s54_s1, 128  ;;  %p69_p1 = scmp.lt.s32.totalorder %s54_s1, %s54_s1 }
   0x6   :  { %v20_v6 = vrot.slane %v14_v2, %v19_v4  ;;  %p65_p0 = scmp.ne.s32.totalorder %s54_s1, %s64_s13  ;;  %p70_p2 = scmp.lt.s32.totalorder %s64_s13, %s64_s13 }
   0x8   :  { %vm21_vm1 = vcmp.eq.s32.totalorder %v16_v3, %v20_v6  ;;  %p71_p3 = por %p70_p2, %p69_p1 }
   0x9   :  { %v22_v7 = vsel %vm21_vm1, %v12_v5, 0.0 }
   0xa   :  { %v24_v8 = vsel %vm23_vm0, %v22_v7, 0.0  ;;  %p72_p4 = pnand %p71_p3, %p65_p0 }
   0xb   :  { %v25_v9 = vrot.slane %v24_v8, 4 }
   0xd   :  { %v26_v10 = vadd.f32 %v25_v9, %v24_v8 }
   0xf   :  { %v27_v11 = vrot.slane %v26_v10, 2 }
  0x11   :  { %v28_v12 = vadd.f32 %v27_v11, %v26_v10 }
  0x13   :  { %v29_v13 = vrot.slane %v28_v12, 1 }
  0x15   :  { %v30_v14 = vadd.f32 %v29_v13, %v28_v12 }
  0x17   :  { %v61_v15 = vadd.f32 -1.0, %v30_v14 }
  0x19   :  { %v32_v16 = vsub.f32 %v12_v5, %v61_v15 }
  0x1b   :  { %v33_v17 = vmax.f32 %v32_v16, 0.0 }
  0x1d   :  { %v34_v18 = vsel %vm23_vm0, %v33_v17, 0.0 }
  0x1e   :  { %v35_v19 = vrot.slane %v34_v18, 4 }
  0x20   :  { %v36_v20 = vadd.f32 %v35_v19, %v34_v18 }
  0x22   :  { %v37_v21 = vrot.slane %v36_v20, 2 }
  0x24   :  { %v38_v22 = vadd.f32 %v37_v21, %v36_v20 }
  0x26   :  { %v39_v23 = vrot.slane %v38_v22, 1 }
  0x28   :  { %v40_v24 = vadd.f32 %v39_v23, %v38_v22 }
  0x2a   :  { %v62_v25 = vadd.f32 -1.0, %v40_v24 }
  0x2c   :  { %v43_v26 = vsel %vm42_vm2, %v62_v25, 0.0 }
  0x2d   :  { %44 = vadd.xlane.f32.xlu0 %v43_v26 }
  0xb6   :  { %v45_v27 = vpop.xlane.xlu0 %44 }
  0xb7   :  { %46 = vst [vmem:[#allocation2] sm:$0xff] %v45_v27 }
  0xb8   :  { %75 = shalt.err (!%p72_p4)
}
  0xb9   :  { %56 = dma.vmem_to_hbm [thread:$0]  %s54_s1, 128, %s113_s2, [#allocation3]  }
  0xba   :  { %84 = dma.done.wait [#allocation3], 128  }
  0xbb   :  { %85 = vsyncadd [#allocation3], 4294967168 }
  0xbc   :  { %60 = vsyncpa [#allocation3], 1 }

</bundles_post_ra>
